<compile_context>
chip_gen: v7x
topology: tpu7x:2x2x1
jax: 0.10.0
libtpu: 0.0.40
codegen_flags: <defaults>
</compile_context>

<pallas_src>
import jax
import jax.numpy as jnp
from jax.experimental import pallas as pl
from jax.experimental.pallas import tpu as pltpu


def _decoder_copy_kernel(x_hbm, o_hbm, sem):
    # Direct HBM->HBM DMA of the entire array: no VMEM staging, no vld/vst
    # work, no lane-masking from the narrow (H=32) last dim.
    cp = pltpu.make_async_copy(x_hbm, o_hbm, sem)
    cp.start()
    cp.wait()


def decoder_forward(X, state, *, materialize=True):
    """Pallas stand-in for the abstract Decoder.forward(X, state).

    X:     (B, S, H) array.
    state: arbitrary pytree -> returned unchanged (plain JAX glue).

    materialize=False : zero-copy identity (fastest; no HBM traffic at all).
    materialize=True  : produce a fresh output buffer via a single HBM->HBM
                        async DMA inside a Pallas kernel (exercised in the
                        demo below).
    """
    if not materialize:
        # Highest-value optimization from the review: don't launch anything.
        return X, state

    out = pl.pallas_call(
        _decoder_copy_kernel,
        out_shape=jax.ShapeDtypeStruct(X.shape, X.dtype),
        # Keep both operands in place (HBM); the kernel body moves the data
        # with one DMA instead of auto-pipelining HBM->VMEM->HBM tiles.
        in_specs=[pl.BlockSpec(memory_space=pl.ANY)],
        out_specs=pl.BlockSpec(memory_space=pl.ANY),
        scratch_shapes=[pltpu.SemaphoreType.DMA],
    )(X)
    return out, state


if __name__ == "__main__":
    key = jax.random.PRNGKey(0)
    k_x, k_s = jax.random.split(key)

    # Small, decoder-flavored shapes: batch=2, seq=8, hidden=32.
    X = jax.random.normal(k_x, (2, 8, 32), dtype=jnp.float32)
    # Representative "state" (e.g. encoder outputs) — passed through untouched.
    state = jax.random.normal(k_s, (2, 8, 32), dtype=jnp.float32)

    # Materialized path: exercises the Pallas direct-DMA kernel on device.
    Y, new_state = decoder_forward(X, state, materialize=True)
    Y = jax.block_until_ready(Y)
    new_state = jax.block_until_ready(new_state)

    # Zero-copy fast path (preferred in real pipelines).
    Y_fast, state_fast = decoder_forward(X, state, materialize=False)

    assert Y.shape == X.shape and Y.dtype == X.dtype
    assert jnp.allclose(Y, X)
    assert Y_fast is X
    assert state_fast is state
    assert new_state is state or jnp.allclose(new_state, state)

    print("KERNEL_OK")
</pallas_src>

<mosaic_0001>
module attributes {stable_mosaic.version = 11 : i64} {
  func.func @_decoder_copy_kernel(%arg0: memref<2x8x32xf32, #tpu.memory_space<any>>, %arg1: memref<2x8x32xf32, #tpu.memory_space<any>>, %arg2: memref<!tpu.dma_semaphore, #tpu.memory_space<semaphore_mem>>) attributes {dimension_semantics = [], scalar_prefetch = 0 : i64, scratch_operands = 1 : i64, tpu.core_type = #tpu.core_type<tc>} {
    tpu.enqueue_dma source(%arg0 : memref<2x8x32xf32, #tpu.memory_space<any>>) target(%arg1 : memref<2x8x32xf32, #tpu.memory_space<any>>) target_semaphore(%arg2 : memref<!tpu.dma_semaphore, #tpu.memory_space<semaphore_mem>>)
    tpu.wait_dma2 semaphore(%arg2 : memref<!tpu.dma_semaphore, #tpu.memory_space<semaphore_mem>>) src(%arg0 : memref<2x8x32xf32, #tpu.memory_space<any>>) dst(%arg1 : memref<2x8x32xf32, #tpu.memory_space<any>>)
    return
  }
}

</mosaic_0001>

<bundles_post_ra>
// kernel: tpu_custom_call.1
= control target key start
LH: loop header
LB: loop body
LE: loop exit
PB: predicated region body
PF: predicated region fallthrough
CT: control target
= control target key end

     0   :  { %s35_s6 = smov [#allocation2]   ;;  %s36_s7 = smov [#allocation3]   ;;  %s54_s0 = inlined_call_operand.hbm [shape: f32[2,8,32], index: 0, kind: input, shape index: {}]   ;;  %s55_s1 = inlined_call_operand.hbm [shape: f32[2,8,32], index: 1, kind: output, shape index: {}]  }
   0x1   :  { %s37_s8 = smov 0  }
   0x2   :  { %18 = dma.general %s54_s0, 256, %s55_s1, %s35_s6, %s36_s7, [#allocation4], %s37_s8, 0  }
   0x3   :  { %33 = dma.done.wait [#allocation2], 256 }
   0x4   :  { %34 = vsyncadd [#allocation2], 4294967040 }
   0x5   :  { %23 = vsyncmov [#allocation2] }
   0x8   :  { %s24_s13 = vpop.sfrf %23 }
   0x9   :  { %p29_p0 = scmp.ne.s32.totalorder %s24_s13, 0 }
   0xb   :  { %28 = shalt.err (%p29_p0)  }

</bundles_post_ra>
